<compile_context>
chip_gen: v7x
topology: tpu7x:2x2x1
jax: 0.10.0
libtpu: 0.0.40
codegen_flags: <defaults>
</compile_context>

<pallas_src>
import jax
import jax.numpy as jnp
from jax.experimental import pallas as pl
from jax.experimental.pallas import tpu as pltpu


_LANE_WIDTH = 1024                 # lane-dense row width (multiple of 128 -> unmasked vst)
_ROW_BLOCK = 1024                  # rows per grid step -> 1024*1024*4 B = 4 MiB f32 tile
_VMEM_LIMIT = 32 * 1024 * 1024     # double-buffered in+out at 4 MiB tiles = 16 MiB (+headroom)


def _regression_kernel(wb_ref, x_ref, o_ref):
    # wb_ref: (2,) float32 in SMEM -> [w, b]; x_ref: native-dtype VMEM tile; o_ref: f32.
    w = wb_ref[0]
    b = wb_ref[1]
    o_ref[...] = w * x_ref[...].astype(jnp.float32) + b


def _pack_wb(w, b):
    return jnp.concatenate([
        jnp.asarray(w, dtype=jnp.float32).reshape(1),
        jnp.asarray(b, dtype=jnp.float32).reshape(1),
    ])


def regression_forward(x, w, b):
    """Computes w * x + b elementwise for 1-D x via a Pallas TPU kernel (f32 output)."""
    assert x.ndim == 1
    n = x.shape[0]
    wb = _pack_wb(w, b)
    in_bytes = n * jnp.dtype(x.dtype).itemsize
    cost = pl.CostEstimate(flops=2 * n, transcendentals=0,
                           bytes_accessed=in_bytes + 4 * n)

    if n < _LANE_WIDTH:
        # Genuinely tiny input: one block whose shape equals the full array dims
        # (exempt from the (8, 128) divisibility rule); no padding, no grid.
        x2d = x.reshape(1, n)
        out = pl.pallas_call(
            _regression_kernel,
            out_shape=jax.ShapeDtypeStruct((1, n), jnp.float32),
            in_specs=[
                pl.BlockSpec(memory_space=pltpu.SMEM),   # [w, b]
                pl.BlockSpec((1, n), lambda: (0, 0)),    # x, whole array in VMEM
            ],
            out_specs=pl.BlockSpec((1, n), lambda: (0, 0)),
            cost_estimate=cost,
        )(wb, x2d)
        return out.reshape(n)

    # General path: pad once to a lane-aligned length, view as (rows, 1024),
    # run a 1-D grid of lane-dense 4 MiB tiles (Pallas masks the ragged last
    # row block), then slice the flat output back to n.
    rows = pl.cdiv(n, _LANE_WIDTH)
    padded = rows * _LANE_WIDTH
    xp = x if padded == n else jnp.pad(x, (0, padded - n))
    x2d = xp.reshape(rows, _LANE_WIDTH)

    block_rows = min(_ROW_BLOCK, rows)   # < _ROW_BLOCK only when it equals full rows (exempt)
    grid = (pl.cdiv(rows, block_rows),)
    out = pl.pallas_call(
        _regression_kernel,
        out_shape=jax.ShapeDtypeStruct((rows, _LANE_WIDTH), jnp.float32),
        grid=grid,
        in_specs=[
            pl.BlockSpec(memory_space=pltpu.SMEM),                       # [w, b]
            pl.BlockSpec((block_rows, _LANE_WIDTH), lambda i: (i, 0)),   # x tile
        ],
        out_specs=pl.BlockSpec((block_rows, _LANE_WIDTH), lambda i: (i, 0)),
        compiler_params=pltpu.CompilerParams(
            dimension_semantics=("parallel",),        # megacore / 2-TC split on v7x
            vmem_limit_bytes=_VMEM_LIMIT),
        cost_estimate=cost,
    )(wb, x2d)
    out = out.reshape(padded)
    return out if padded == n else out[:n]


if __name__ == "__main__":
    key = jax.random.PRNGKey(0)
    kw, kb, kx = jax.random.split(key, 3)

    # Deterministic parameter init mirroring torch.rand([1]) (uniform [0, 1)).
    w = jax.random.uniform(kw, (1,), dtype=jnp.float32)
    b = jax.random.uniform(kb, (1,), dtype=jnp.float32)

    # Same data as the original script (tiny single-block path).
    x_small = jnp.array([1, 5, 10, 10, 25, 50, 70, 75, 100], dtype=jnp.float32)
    y_small = jax.block_until_ready(regression_forward(x_small, w, b))
    ref_small = w[0] * x_small + b[0]
    assert y_small.shape == x_small.shape
    assert jnp.allclose(y_small, ref_small, atol=1e-6)

    # Medium, lane-unaligned input -> padded lane-dense single-row-block path.
    x_med = jax.random.uniform(kx, (5000,), dtype=jnp.float32) * 100.0
    y_med = jax.block_until_ready(regression_forward(x_med, w, b))
    ref_med = w[0] * x_med + b[0]
    assert y_med.shape == x_med.shape
    assert jnp.allclose(y_med, ref_med, atol=1e-5)

    # Larger, unaligned input exercising the multi-step gridded path with a
    # ragged last row block and a padded tail.
    n_big = 2 * _ROW_BLOCK * _LANE_WIDTH + 777
    x_big = jax.random.uniform(jax.random.PRNGKey(1), (n_big,), dtype=jnp.float32) * 100.0
    y_big = jax.block_until_ready(regression_forward(x_big, w, b))
    ref_big = w[0] * x_big + b[0]
    assert y_big.shape == x_big.shape
    assert jnp.allclose(y_big, ref_big, atol=1e-5)

    print("KERNEL_OK")
</pallas_src>

<mosaic_0001>
module attributes {stable_mosaic.version = 11 : i64} {
  func.func @_regression_kernel(%arg0: memref<2xf32, #tpu.memory_space<smem>>, %arg1: memref<1x9xf32, #tpu.memory_space<vmem>>, %arg2: memref<1x9xf32, #tpu.memory_space<vmem>>) attributes {dimension_semantics = [], scalar_prefetch = 0 : i64, scratch_operands = 0 : i64, tpu.core_type = #tpu.core_type<tc>} {
    %c0 = arith.constant 0 : index
    %0 = memref.load %arg0[%c0] : memref<2xf32, #tpu.memory_space<smem>>
    %c1 = arith.constant 1 : index
    %1 = memref.load %arg0[%c1] : memref<2xf32, #tpu.memory_space<smem>>
    %c0_0 = arith.constant 0 : index
    %c0_1 = arith.constant 0 : index
    %2 = vector.load %arg1[%c0_0, %c0_1] : memref<1x9xf32, #tpu.memory_space<vmem>>, vector<1x9xf32>
    %3 = vector.broadcast %0 : f32 to vector<1x9xf32>
    %4 = arith.mulf %3, %2 : vector<1x9xf32>
    %5 = vector.broadcast %1 : f32 to vector<1x9xf32>
    %6 = arith.addf %4, %5 : vector<1x9xf32>
    %c0_2 = arith.constant 0 : index
    %c0_3 = arith.constant 0 : index
    %7 = vector.load %arg2[%c0_2, %c0_3] : memref<1x9xf32, #tpu.memory_space<vmem>>, vector<1x9xf32>
    tpu.vector_store %arg2[%c0_2, %c0_3], %6 {strides = array<i32>} : memref<1x9xf32, #tpu.memory_space<vmem>>, vector<1x9xf32>,
    return
  }
}

</mosaic_0001>

<bundles_post_ra>
// kernel: tpu_custom_call.1
= control target key start
LH: loop header
LB: loop body
LE: loop exit
PB: predicated region body
PF: predicated region fallthrough
CT: control target
= control target key end

     0   :  { %7 = vsyncpa [#allocation4], 0  ;;  %s130_s0 = inlined_call_operand.hbm [shape: f32[2], index: 0, kind: input, shape index: {}]   ;;  %s131_s1 = inlined_call_operand.vmem [shape: f32[1,9], index: 1, kind: input, shape index: {}]   ;;  %s132_s2 = inlined_call_operand.hbm [shape: f32[1,9], index: 2, kind: output, shape index: {}]  }
   0x1   :  { %8 = vsyncpa [#allocation3], 0  ;;  %s50_s11 = scalar_lea.hbm %s130_s0, 16 }
   0x2   :  { %p51_p0 = scmp.ne.s32.totalorder %s130_s0, %s50_s11  ;;  %p54_p1 = scmp.lt.u32.totalorder %s50_s11, %s130_s0 }
   0x4   :  { %p56_p2 = pnand %p54_p1, %p51_p0 }
   0x6   :  { %59 = shalt.err (!%p56_p2)
}
   0x7   :  { %s86_s16 = smov [#allocation2]  }
   0x8   :  { %16 = dma.hbm_to_smem %s130_s0, 16, %s86_s16, [#allocation4]  }
   0x9   :  { %82 = dma.done.wait [#allocation4], 16  }
   0xa   :  { %83 = vsyncadd [#allocation4], 4294967280 }
   0xb   :  { %22 = sfence }
   0xc   :  { %s23_s19 = sld [smem:[#allocation2]]  ;;  %s47_s20 = sld [smem:[#allocation2 + $0x1]]  ;;  %v25_v0 = vld [vmem:[%s131_s1] sm:$0x1]  ;;  %vm30_vm0 = vcmask 65536  }
   0xd   :  { %s87_s23 = smov [#allocation5]  }
   0xe   :  { %s38_s24 = sshll.u32 %s87_s23, 4  ;;  %s39_s24 = int_to_ptr.vmem [resolvable:$true] %s38_s24 }
   0xf   :  { %s60_s25 = scalar_lea.vmem %s39_s24, 16  ;;  %s64_s0 = scalar_lea.vmem %s39_s24, 32 }
  0x10   :  { %p61_p3 = scmp.ne.s32.totalorder %s39_s24, %s60_s25  ;;  %p65_p4 = scmp.lt.s32.totalorder %s39_s24, %s39_s24 }
  0x11   :  { %p66_p5 = scmp.lt.s32.totalorder %s64_s0, %s60_s25 }
  0x12   :  { %v26_v1 = vstv %s23_s19  ;;  %v28_v2 = vstv %s47_s20 }
  0x13   :  { %v27_v3 = vmul.f32 %v26_v1, %v25_v0  ;;  %p67_p6 = por %p66_p5, %p65_p4 }
  0x15   :  { %v29_v4 = vadd.f32 %v28_v2, %v27_v3  ;;  %p68_p7 = pnand %p67_p6, %p61_p3 }
  0x17   :  { %31 = vst.msk [vmem:[#allocation5] sm:$0x1] %vm30_vm0, %v29_v4 }
  0x18   :  { %71 = shalt.err (!%p68_p7)
}
  0x19   :  { %s72_s1 = scalar_lea.hbm %s132_s2, 16 }
  0x1a   :  { %p73_p8 = scmp.ne.s32.totalorder %s132_s2, %s72_s1  ;;  %p76_p9 = scmp.lt.u32.totalorder %s72_s1, %s132_s2 }
  0x1c   :  { %p78_p10 = pnand %p76_p9, %p73_p8 }
  0x1e   :  { %81 = shalt.err (!%p78_p10)
}
  0x1f   :  { %41 = dma.vmem_to_hbm [thread:$0]  %s39_s24, 16, %s132_s2, [#allocation3]  }
  0x20   :  { %84 = dma.done.wait [#allocation3], 16  }
  0x21   :  { %85 = vsyncadd [#allocation3], 4294967280 }
  0x22   :  { %45 = vsyncpa [#allocation3], 1 }
  0x23   :  { %46 = vsyncpa [#allocation4], 1 }

</bundles_post_ra>
